<compile_context>
chip_gen: v6e
topology: v6e:2x2x1
jax: 0.10.0
libtpu: 0.0.40
codegen_flags: <defaults>
</compile_context>

<pallas_src>
import functools
import math

import jax
import jax.numpy as jnp
from jax.experimental import pallas as pl
from jax.experimental.pallas import tpu as pltpu


def _scalar_multiply_kernel(x_ref, o_ref, *, scale):
    # Pure load -> VPU multiply -> store; scale is a baked-in constant.
    o_ref[...] = (x_ref[...] * scale).astype(o_ref.dtype)


def _choose_cols(total):
    """Largest lane-dense trailing width (multiple of 128) dividing `total`."""
    for c in (1024, 512, 256, 128):
        if total % c == 0:
            return c
    return None


def scalar_multiply(x, scale, *, tile_rows=None):
    """Pallas implementation of ScalarMultiply.forward: x * scale."""
    orig_shape = x.shape
    total = math.prod(orig_shape) if orig_shape else 1
    itemsize = jnp.dtype(x.dtype).itemsize
    scale = float(scale)
    kernel = functools.partial(_scalar_multiply_kernel, scale=scale)

    cols = _choose_cols(total)
    if cols is None:
        # TODO(synk): element count not a multiple of 128 -> single full block
        # (no padding copy; fine for the small/ragged shapes this path sees).
        x2 = x.reshape(1, total)
        out = pl.pallas_call(
            kernel,
            out_shape=jax.ShapeDtypeStruct(x2.shape, x.dtype),
            grid=(1,),
            in_specs=[pl.BlockSpec((1, total), lambda i: (0, 0))],
            out_specs=pl.BlockSpec((1, total), lambda i: (0, 0)),
            compiler_params=pltpu.CompilerParams(
                dimension_semantics=("parallel",)),
        )(x2)
        return out.reshape(orig_shape)

    rows = total // cols
    x2 = x.reshape(rows, cols)  # free reshape (contiguous), lane-dense layout

    # Tile the row axis. Target ~2 MiB input blocks: big enough to amortize
    # the ~0.35 us per-step overhead and approach HBM roofline, small enough
    # that 2x(in)+2x(out) double-buffered blocks (~8 MiB) fit comfortably in
    # the scoped-VMEM budget on every generation (v5e 16 MiB default,
    # v7x 64 MiB physical).
    if tile_rows is None:
        target_bytes = 2 << 20
        tr = max(8, (target_bytes // (cols * itemsize)) // 8 * 8)
        tile_rows = min(rows, tr)
    else:
        tile_rows = int(tile_rows)
        if tile_rows >= rows:
            tile_rows = rows
        elif tile_rows % 8 != 0:
            tile_rows = max(8, tile_rows // 8 * 8)  # (8,128) block constraint

    grid = (pl.cdiv(rows, tile_rows),)
    block_bytes = tile_rows * cols * itemsize
    # Explicit VMEM budget derived from the block sizes (with headroom),
    # kept under v7x's 64 MiB physical VMEM.
    vmem_limit = min(48 << 20, max(8 << 20, 6 * block_bytes))

    out = pl.pallas_call(
        kernel,
        out_shape=jax.ShapeDtypeStruct((rows, cols), x.dtype),
        grid=grid,
        in_specs=[pl.BlockSpec((tile_rows, cols), lambda i: (i, 0))],
        out_specs=pl.BlockSpec((tile_rows, cols), lambda i: (i, 0)),
        compiler_params=pltpu.CompilerParams(
            dimension_semantics=("parallel",),
            vmem_limit_bytes=int(vmem_limit)),
    )(x2)
    return out.reshape(orig_shape)


def scalar_multiply_ref(x, scale):
    """Pure-JAX reference mirroring the PyTorch forward."""
    return x * float(scale)


if __name__ == "__main__":
    key = jax.random.PRNGKey(0)
    k1, k2 = jax.random.split(key)
    scale = 0.5 ** 0.5  # typical fixed scale used in zipformer

    # Case 1: (seq_len, batch, channels) with a lane-aligned element count;
    # tile_rows=8 gives a multi-step pipelined grid (rows=16 -> 2 steps).
    x1 = jax.random.normal(k1, (64, 2, 128), dtype=jnp.float32)
    out1 = jax.block_until_ready(scalar_multiply(x1, scale, tile_rows=8))
    assert out1.shape == x1.shape
    assert jnp.allclose(out1, scalar_multiply_ref(x1, scale),
                        atol=1e-6, rtol=1e-6), "mismatch vs reference (aligned)"

    # Case 2: ragged shape exercising the unaligned single-block fallback.
    x2 = jax.random.normal(k2, (10, 2, 3), dtype=jnp.float32)
    out2 = jax.block_until_ready(scalar_multiply(x2, scale))
    assert out2.shape == x2.shape
    assert jnp.allclose(out2, scalar_multiply_ref(x2, scale),
                        atol=1e-6, rtol=1e-6), "mismatch vs reference (ragged)"

    print("KERNEL_OK")
</pallas_src>

<mosaic_0001>
module attributes {stable_mosaic.version = 11 : i64} {
  func.func @_scalar_multiply_kernel(%arg0: i32, %arg1: memref<8x1024xf32, #tpu.memory_space<vmem>>, %arg2: memref<8x1024xf32, #tpu.memory_space<vmem>>) attributes {dimension_semantics = [#tpu.dimension_semantics<parallel>], iteration_bounds = array<i64: 2>, scalar_prefetch = 0 : i64, scratch_operands = 0 : i64, tpu.core_type = #tpu.core_type<tc>, window_params = [{transform_indices = @transform_0, window_bounds = array<i64: 8, 1024>}, {transform_indices = @transform_1, window_bounds = array<i64: 8, 1024>}]} {
    %c0 = arith.constant 0 : index
    %c0_0 = arith.constant 0 : index
    %0 = vector.load %arg1[%c0, %c0_0] : memref<8x1024xf32, #tpu.memory_space<vmem>>, vector<8x1024xf32>
    %cst = arith.constant 0.707106769 : f32
    %1 = vector.broadcast %cst : f32 to vector<8x1024xf32>
    %2 = arith.mulf %0, %1 : vector<8x1024xf32>
    %c0_1 = arith.constant 0 : index
    %c0_2 = arith.constant 0 : index
    %3 = vector.load %arg2[%c0_1, %c0_2] : memref<8x1024xf32, #tpu.memory_space<vmem>>, vector<8x1024xf32>
    tpu.vector_store %arg2[%c0_1, %c0_2], %2 {strides = array<i32>} : memref<8x1024xf32, #tpu.memory_space<vmem>>, vector<8x1024xf32>,
    return
  }
  func.func @transform_0(%arg0: i32) -> (i32, i32) {
    %c0_i32 = arith.constant 0 : i32
    %c0_i32_0 = arith.constant 0 : i32
    return %arg0, %c0_i32 : i32, i32
  }
  func.func @transform_1(%arg0: i32) -> (i32, i32) {
    %c0_i32 = arith.constant 0 : i32
    %c0_i32_0 = arith.constant 0 : i32
    return %arg0, %c0_i32 : i32, i32
  }
}

</mosaic_0001>

<bundles_post_ra>
// kernel: tpu_custom_call.1
= control target key start
LH: loop header
LB: loop body
LE: loop exit
PB: predicated region body
PF: predicated region fallthrough
CT: control target
= control target key end

     0   :  { %6 = vsyncpa [#allocation3], 0  ;;  %s557_s0 = inlined_call_operand.hbm [shape: f32[16,1024], index: 0, kind: input, shape index: {}]   ;;  %s558_s1 = inlined_call_operand.hbm [shape: f32[16,1024], index: 1, kind: output, shape index: {}]  }
   0x1   :  { %8 = vsyncpa [#allocation3 + $0x1], 0 }
   0x2   :  { %9 = vsyncpa [#allocation4], 0 }
   0x3   :  { %11 = vsyncpa [#allocation4 + $0x1], 0  ;;  %s410_s6 = smov 0   ;;  %s412_s7 = smov 0  }
   0x4   :  { %s414_s8 = smov 0   ;;  %s416_s9 = smov 0  }
   0x5 LB: > { %s431_s10 = sadd.s32 4294967295, %s396_s9   ;;  %s242_s11 = sadd.s32 4294967294, %s396_s9   ;;  %s396_s9 = sphi %s416_s9, %s575_s9   ;;  %s392_s8 = sphi %s414_s8, %s574_s8   ;;  %s388_s7 = sphi %s412_s7, %s573_s7   ;;  %s384_s6 = sphi %s410_s6, %s572_s6  }
   0x6   : > { %s435_s12 = sadd.s32 1, %s396_s9   ;;  %s24_s13 = sadd.s32 1, %s392_s8 }
   0x7   : > { %s21_s14 = ssub.s32 %s396_s9, %s435_s12  ;;  %p31_p0 = scmp.ne.s32.totalorder %s392_s8, %s388_s7 }
   0x8   : > { %p22_p1 = scmp.eq.s32.totalorder %s21_s14, 0  ;;  %p32_p2 = scmp.eq.s32.totalorder %s396_s9, 0 }
   0x9   : > { %p37_p3 = scmp.ne.s32.totalorder %s388_s7, %s384_s6  ;;  %p38_p4 = scmp.eq.s32.totalorder %s431_s10, 0 }
   0xa   : > { %s447_s15 = scalar_select %p22_p1, %s392_s8, %s24_s13  }
   0xb   : > { %p449_p5 = por %p32_p2, %p31_p0  ;;  %p453_p6 = por %p38_p4, %p37_p3 }
   0xc   : > { %p61_p7 = scmp.eq.s32.totalorder %s431_s10, 1  ;;  %p67_p8 = scmp.eq.s32.totalorder %s242_s11, 1 }
   0xd   : > { %s562_s17 = scalar_select %p453_p6, 1, 0 }
   0xe   : > { %p270_p10 = scmp.lt.s32.totalorder %s396_s9, 2  ;;  %p460_p11 = por %p61_p7, %p31_p0 }
   0xf   : > { %p464_p12 = por %p67_p8, %p37_p3  ;;  %s87_s20 = sand.u32 1, %s392_s8  }
  0x10   : > { %s563_s18 = scalar_select %p460_p11, 1, 0 }
  0x11   : > { %s564_s19 = scalar_select %p464_p12, 1, 0 }
  0x12   : > { %s256_s21 = sshll.u32 %s396_s9, 10  ;;  %s245_s22 = sshll.u32 %s87_s20, 6 }
  0x13   : > { %s473_s25 = scalar_lea.hbm %s557_s0, %s256_s21  ;;  %s91_s26 = scalar_lea.vmem [#allocation2], %s245_s22 }
  0x14   : > { %s99_s27 = sshll.u32 %s91_s26, 4  ;;  %p477_p13 = pnand %p270_p10, %p449_p5  ;;  %s481_s27 = int_to_ptr.vmem [resolvable:$true] %s99_s27 }
  0x15   : > { %s88_s29 = scalar_lea.sflag [#allocation3], %s87_s20  ;;  %s304_s30 = scalar_lea.hbm %s473_s25, 1024 }
  0x16   : > { %p305_p2 = scmp.ne.s32.totalorder %s473_s25, %s304_s30  ;;  %p306_p3 = pneg %p477_p13 }
  0x17   : > { %s309_s4 = scalar_lea.hbm %s557_s0, 2048  ;;  %p310_p5 = scmp.lt.s32.totalorder %s473_s25, %s557_s0 }
  0x18   : > { %p307_p4 = pnand %p306_p3, %p305_p2  ;;  %p311_p8 = scmp.lt.s32.totalorder %s309_s4, %s304_s30 }
  0x1a   : > { %p308_p7 = pneg %p307_p4  ;;  %p312_p10 = por %p311_p8, %p310_p5 }
  0x1c   : > { %p313_p9 = pnand %p312_p10, %p308_p7 }
  0x1e   : > { %316 = shalt.err (!%p313_p9)
}
  0x1f   : > { %s317_s13 = scalar_lea.vmem %s481_s27, 1024  ;;  %s398_s14 = smov [#allocation2]  }
  0x20   : > { %p318_p0 = scmp.ne.s32.totalorder %s481_s27, %s317_s13  ;;  %s322_s16 = sshll.u32 %s398_s14, 4  ;;  %s323_s16 = int_to_ptr.vmem [resolvable:$false] %s322_s16 }
  0x21   : > { %s324_s20 = scalar_lea.vmem %s323_s16, 2048  ;;  %p325_p4 = scmp.lt.s32.totalorder %s481_s27, %s323_s16 }
  0x22   : > { %p320_p1 = pnand %p318_p0, %p306_p3  ;;  %p326_p12 = scmp.lt.s32.totalorder %s324_s20, %s317_s13 }
  0x24   : > { %p321_p2 = pneg %p320_p1  ;;  %p327_p11 = por %p326_p12, %p325_p4 }
  0x26   : > { %p328_p6 = pnand %p327_p11, %p321_p2 }
  0x28   : > { %331 = shalt.err (!%p328_p6)
}
  0x29   : > { %265 = dma.hbm_to_vmem [thread:$0]  (!%p477_p13), %s473_s25, 1024, %s481_s27, %s88_s29  }
  0x2a   : > { %p566_p9 = scmp.lt.s32.totalorder %s396_s9, 3  ;;  %p567_p7 = scmp.ge.s32.totalorder %s396_s9, 1 }
  0x2c   : > { %p105_p0 = pnand %p567_p7, %p566_p9 }
  0x2d   : > { %s508_s21 = sand.u32 (!%p105_p0), 1, %s388_s7   ;;  %p568_p6 = scmp.ne.s32.totalorder (!%p105_p0), %s562_s17, 0 }
  0x2e   : > { %108 = sbr.rel (%p105_p0) target bundleno = 79 (0x4f), region = 24  ;;  %s249_s22 = sshll.u32 (!%p105_p0), %s508_s21, 6 }
  0x2f   : > { %s111_s23 = scalar_lea.sflag (!%p105_p0), [#allocation3], %s508_s21  ;;  %s114_s24 = scalar_lea.vmem (!%p105_p0), [#allocation2], %s249_s22 }
  0x33   : > { %375 = dma.done.wait (%p568_p6), %s111_s23, 1024  }
  0x34   : > { %377 = vsyncadd (%p568_p6), %s111_s23, 4294966272  ;;  %v133_v0 = vld [vmem:[%s114_s24] sm:$0xff]  ;;  %v134_v1 = vld [vmem:[%s114_s24 + $0x8] sm:$0xff]  ;;  %s257_s25 = sshll.u32 %s431_s10, 10  ;;  %s132_s26 = scalar_lea.vmem [#allocation5], %s249_s22 }
  0x35   : > { %v135_v2 = vld [vmem:[%s114_s24 + $0x10] sm:$0xff]  ;;  %v141_v3 = vmul.f32 0.70710677, %v133_v0  ;;  %v142_v4 = vmul.f32 0.70710677, %v134_v1  ;;  %v136_v6 = vld [vmem:[%s114_s24 + $0x18] sm:$0xff]  ;;  %s520_s10 = scalar_lea.hbm %s558_s1, %s257_s25 }
  0x36   : > { %v143_v5 = vmul.f32 0.70710677, %v135_v2  ;;  %v137_v7 = vld [vmem:[%s114_s24 + $0x20] sm:$0xff]  ;;  %v138_v8 = vld [vmem:[%s114_s24 + $0x28] sm:$0xff]  ;;  %s172_s27 = sshll.u32 %s132_s26, 4  ;;  %v139_v12 = vld [vmem:[%s114_s24 + $0x30] sm:$0xff]  ;;  %s173_s27 = int_to_ptr.vmem [resolvable:$true] %s172_s27 }
  0x37   : > { %149 = vst [vmem:[%s132_s26] sm:$0xff] %v141_v3  ;;  %150 = vst [vmem:[%s132_s26 + $0x8] sm:$0xff] %v142_v4  ;;  %v144_v9 = vmul.f32 0.70710677, %v136_v6  ;;  %v145_v10 = vmul.f32 0.70710677, %v137_v7  ;;  %v140_v13 = vld [vmem:[%s114_s24 + $0x38] sm:$0xff] }
  0x38   : > { %151 = vst [vmem:[%s132_s26 + $0x10] sm:$0xff] %v143_v5  ;;  %v146_v11 = vmul.f32 0.70710677, %v138_v8  ;;  %v147_v14 = vmul.f32 0.70710677, %v139_v12  ;;  %s158_s29 = scalar_lea.sflag [#allocation4], %s508_s21 }
  0x39   : > { %152 = vst [vmem:[%s132_s26 + $0x18] sm:$0xff] %v144_v9  ;;  %153 = vst [vmem:[%s132_s26 + $0x20] sm:$0xff] %v145_v10  ;;  %v148_v15 = vmul.f32 0.70710677, %v140_v13  ;;  %s332_s30 = scalar_lea.vmem %s173_s27, 1024  ;;  %p569_p12 = scmp.ne.s32.totalorder %s563_s18, 0 }
  0x3a   : > { %154 = vst [vmem:[%s132_s26 + $0x28] sm:$0xff] %v146_v11  ;;  %155 = vst [vmem:[%s132_s26 + $0x30] sm:$0xff] %v147_v14  ;;  %p333_p11 = scmp.ne.s32.totalorder %s173_s27, %s332_s30  ;;  %s399_s2 = smov [#allocation5]  }
  0x3b   : > { %156 = vst [vmem:[%s132_s26 + $0x38] sm:$0xff] %v148_v15  ;;  %s336_s3 = sshll.u32 %s399_s2, 4  ;;  %s337_s3 = int_to_ptr.vmem [resolvable:$false] %s336_s3 }
  0x3c   : > { %p334_p13 = pnand %p333_p11, %p569_p12  ;;  %s338_s4 = scalar_lea.vmem %s337_s3, 2048 }
  0x3d   : > { %p339_p3 = scmp.lt.s32.totalorder %s173_s27, %s337_s3  ;;  %p340_p5 = scmp.lt.s32.totalorder %s338_s4, %s332_s30 }
  0x3e   : > { %p335_p1 = pneg %p334_p13 }
  0x3f   : > { %p341_p8 = por %p340_p5, %p339_p3 }
  0x41   : > { %p342_p10 = pnand %p341_p8, %p335_p1 }
  0x43   : > { %345 = shalt.err (!%p342_p10)
}
  0x44   : > { %s346_s5 = scalar_lea.hbm %s520_s10, 1024  ;;  %s350_s14 = scalar_lea.hbm %s558_s1, 2048 }
  0x45   : > { %p347_p2 = scmp.ne.s32.totalorder %s520_s10, %s346_s5  ;;  %p351_p7 = scmp.lt.s32.totalorder %s520_s10, %s558_s1 }
  0x46   : > { %p352_p0 = scmp.lt.s32.totalorder %s350_s14, %s346_s5 }
  0x47   : > { %p348_p4 = pnand %p347_p2, %p569_p12 }
  0x48   : > { %p353_p6 = por %p352_p0, %p351_p7 }
  0x49   : > { %p349_p9 = pneg %p348_p4 }
  0x4b   : > { %p354_p11 = pnand %p353_p6, %p349_p9 }
  0x4d   : > { %357 = shalt.err (!%p354_p11)
}
  0x4e   : > { %260 = dma.vmem_to_hbm [thread:$0]  (%p569_p12), %s173_s27, 1024, %s520_s10, %s158_s29  }
  0x4f PF: > { %s184_s21 = sand.u32 1, %s384_s6   ;;  %p570_p13 = scmp.ne.s32.totalorder %s564_s19, 0 }
  0x50   : > { %p571_p1 = scmp.ge.s32.totalorder %s396_s9, 2  ;;  %s185_s22 = scalar_lea.sflag [#allocation4], %s184_s21 }
  0x52   : > { %p267_p3 = pnand %p571_p1, %p570_p13 }
  0x54   : > { %p268_p5 = pneg %p267_p3 }
  0x56   : > { %379 = dma.done.wait (%p268_p5), %s185_s22, 1024  }
  0x57   : > { %381 = vsyncadd (%p268_p5), %s185_s22, 4294966272  ;;  %p14_p8 = scmp.ge.s32.totalorder %s435_s12, 4   ;;  %s572_s6 = smov %s388_s7 }
  0x58   : > { %s573_s7 = smov %s392_s8  ;;  %s574_s8 = smov %s447_s15 }
  0x59   : > { %s575_s9 = smov %s435_s12  ;;  %16 = sbr.rel (!%p14_p8) target bundleno = 5 (0x5), region = 69 }
  0x5e   :  { %190 = vsyncpa [#allocation3], 1 }
  0x5f   :  { %192 = vsyncpa [#allocation3 + $0x1], 1 }
  0x60   :  { %193 = vsyncpa [#allocation4], 1 }
  0x61   :  { %195 = vsyncpa [#allocation4 + $0x1], 1 }

</bundles_post_ra>
